<compile_context>
chip_gen: v6e
topology: v6e:2x2x1
jax: 0.10.0
libtpu: 0.0.40
codegen_flags: <defaults>
</compile_context>

<pallas_src>
import jax
import jax.numpy as jnp
from jax import lax
from jax.experimental import pallas as pl
from jax.experimental.pallas import tpu as pltpu

_LANES = 128
_MAX_BLOCK_ROWS = 4096  # 4096 * 128 * 4B = 2 MiB per f32 input block


def _make_kernel(eps2: float, rows: int, block_rows: int, acc_rows: int,
                 ncs: int, needs_row_mask: bool, with_mask: bool):
    """Build the Pallas kernel. All closed-over values are Python scalars."""

    def _fold(v):
        # (block_rows, 128) -> (acc_rows, 128) via vreg-aligned elementwise adds
        if block_rows == acc_rows:
            return v
        return v.reshape(block_rows // acc_rows, acc_rows, _LANES).sum(axis=0)

    def _row_valid(c, i):
        g = ncs * i + c                      # global (unclamped) block index
        base = g * block_rows
        rid = lax.broadcasted_iota(jnp.int32, (block_rows, _LANES), 0)
        return (base + rid) < rows

    if with_mask:
        def kernel(x_ref, m_ref, vsum_ref, msum_ref, vacc_ref, macc_ref):
            c = pl.program_id(0)
            i = pl.program_id(1)
            last = pl.num_programs(1) - 1

            @pl.when(i == 0)
            def _():
                vacc_ref[...] = jnp.zeros_like(vacc_ref)
                macc_ref[...] = jnp.zeros_like(macc_ref)

            def accumulate(apply_row_mask):
                x = x_ref[...].astype(jnp.float32)
                m = m_ref[...].astype(jnp.float32)
                if apply_row_mask:
                    valid = _row_valid(c, i)
                    # zero x BEFORE the sqrt so garbage inf/nan cannot reach
                    # the product (0 * nan would poison the sum)
                    x = jnp.where(valid, x, 0.0)
                    m = jnp.where(valid, m, 0.0)
                val = jnp.sqrt(eps2 + x * x) * m
                vacc_ref[...] += _fold(val)
                macc_ref[...] += _fold(m)

            if needs_row_mask:
                @pl.when(i != last)
                def _():
                    accumulate(False)

                @pl.when(i == last)
                def _():
                    accumulate(True)
            else:
                accumulate(False)

            @pl.when(i == last)
            def _():
                vsum_ref[...] = jnp.sum(vacc_ref[...], keepdims=True)
                msum_ref[...] = jnp.sum(macc_ref[...], keepdims=True)

        return kernel

    def kernel(x_ref, vsum_ref, vacc_ref):
        c = pl.program_id(0)
        i = pl.program_id(1)
        last = pl.num_programs(1) - 1

        @pl.when(i == 0)
        def _():
            vacc_ref[...] = jnp.zeros_like(vacc_ref)

        def accumulate(apply_row_mask):
            x = x_ref[...].astype(jnp.float32)
            val = jnp.sqrt(eps2 + x * x)
            if apply_row_mask:
                # keep the where AFTER the sqrt so garbage inf/nan is replaced
                val = jnp.where(_row_valid(c, i), val, 0.0)
            vacc_ref[...] += _fold(val)

        if needs_row_mask:
            @pl.when(i != last)
            def _():
                accumulate(False)

            @pl.when(i == last)
            def _():
                accumulate(True)
        else:
            accumulate(False)

        @pl.when(i == last)
        def _():
            vsum_ref[...] = jnp.sum(vacc_ref[...], keepdims=True)

    return kernel


def l1_loss(item, mask=None, *, epsilon=1e-5, divide_nitems=False,
            max_block_rows=_MAX_BLOCK_ROWS):
    """JAX/Pallas equivalent of L1_Loss.forward."""
    item = jnp.asarray(item)                 # keep native dtype; kernel upcasts per block
    if item.ndim <= 3:
        item = item[..., None]
    numel = int(item.size)
    eps2 = float(epsilon) ** 2

    if mask is not None:
        mask = jnp.asarray(mask)
        if mask.dtype == jnp.bool_:
            mask = mask.astype(jnp.int8)     # keep traffic at 1 byte/elem, avoid i1 quirks
        m_flat = mask.reshape(-1)
    else:
        m_flat = None

    x_flat = item.reshape(-1)

    rows = numel // _LANES
    tail = numel - rows * _LANES

    # ----- ragged (<128-element) tail: plain XLA; avoids padding the whole tensor -----
    if tail:
        xt = x_flat[rows * _LANES:].astype(jnp.float32)
        tval = jnp.sqrt(eps2 + xt * xt)
        if m_flat is not None:
            mt = m_flat[rows * _LANES:].astype(jnp.float32)
            tail_total = jnp.sum(tval * mt)
            tail_msum = jnp.sum(mt)
        else:
            tail_total = jnp.sum(tval)
            tail_msum = jnp.float32(tail)
    else:
        tail_total = jnp.float32(0.0)
        tail_msum = jnp.float32(0.0)

    if rows == 0:
        total = tail_total
        msum = tail_msum
    else:
        # ----- 128-aligned bulk: single-pass streaming reduction in Pallas -----
        x2 = x_flat[:rows * _LANES].reshape(rows, _LANES)

        if rows % 8 == 0:
            block_rows = min(rows, max_block_rows)
        elif rows <= max_block_rows:
            block_rows = rows                # full-extent block: any size allowed
        else:
            block_rows = (max_block_rows // 8) * 8
        acc_rows = 8 if (block_rows % 8 == 0 and block_rows >= 8) else block_rows

        blocks_total = pl.cdiv(rows, block_rows)
        ncs = 2 if blocks_total > 1 else 1   # split across both TCs (v7x); serial on 1-TC chips
        bpc = pl.cdiv(blocks_total, ncs)     # blocks per core
        needs_row_mask = (ncs * bpc * block_rows != rows)
        needs_clamp = (ncs * bpc != blocks_total)

        def in_map(c, i):
            g = ncs * i + c                  # interleaved: partial/OOB only at i == last
            if needs_clamp:
                g = jnp.minimum(g, blocks_total - 1)
            return (g, 0)

        in_spec = pl.BlockSpec((block_rows, _LANES), in_map)
        out_spec = pl.BlockSpec((1, 1), lambda c, i: (c, 0))
        acc = pltpu.VMEM((acc_rows, _LANES), jnp.float32)
        cparams = pltpu.CompilerParams(
            dimension_semantics=("parallel", "arbitrary"),
            vmem_limit_bytes=32 * 1024 * 1024,
        )
        main_elems = rows * _LANES
        bytes_accessed = main_elems * item.dtype.itemsize
        if m_flat is not None:
            bytes_accessed += main_elems * mask.dtype.itemsize
        cost = pl.CostEstimate(flops=3 * main_elems,
                               transcendentals=main_elems,
                               bytes_accessed=int(bytes_accessed))

        if m_flat is None:
            kernel = _make_kernel(eps2, rows, block_rows, acc_rows, ncs,
                                  needs_row_mask, with_mask=False)
            partial = pl.pallas_call(
                kernel,
                out_shape=jax.ShapeDtypeStruct((ncs, 1), jnp.float32),
                grid_spec=pltpu.PrefetchScalarGridSpec(
                    num_scalar_prefetch=0,
                    grid=(ncs, bpc),
                    in_specs=[in_spec],
                    out_specs=out_spec,
                    scratch_shapes=[acc],
                ),
                compiler_params=cparams,
                cost_estimate=cost,
            )(x2)
            total = jnp.sum(partial) + tail_total
            msum = jnp.float32(numel)
        else:
            m2 = m_flat[:rows * _LANES].reshape(rows, _LANES)
            kernel = _make_kernel(eps2, rows, block_rows, acc_rows, ncs,
                                  needs_row_mask, with_mask=True)
            vpart, mpart = pl.pallas_call(
                kernel,
                out_shape=(jax.ShapeDtypeStruct((ncs, 1), jnp.float32),
                           jax.ShapeDtypeStruct((ncs, 1), jnp.float32)),
                grid_spec=pltpu.PrefetchScalarGridSpec(
                    num_scalar_prefetch=0,
                    grid=(ncs, bpc),
                    in_specs=[in_spec, in_spec],
                    out_specs=(out_spec, out_spec),
                    scratch_shapes=[acc, acc],
                ),
                compiler_params=cparams,
                cost_estimate=cost,
            )(x2, m2)
            total = jnp.sum(vpart) + tail_total
            msum = jnp.sum(mpart) + tail_msum

    if divide_nitems:
        # torch: n_items = mask.sum() unless < 1, in which case 1.0
        n_items = jnp.where(msum < 1.0, jnp.float32(1.0), msum)
        return total / n_items
    # argument.mean() == sum(argument) / numel
    return total / jnp.float32(numel)


def _reference(item, mask=None, epsilon=1e-5, divide_nitems=False):
    item = jnp.asarray(item, jnp.float32)
    if item.ndim <= 3:
        item = item[..., None]
    if mask is None:
        mask = jnp.ones_like(item)
    else:
        mask = jnp.asarray(mask, jnp.float32).reshape(item.shape)
    arg = jnp.sqrt(jnp.float32(epsilon) ** 2 + item ** 2) * mask
    if divide_nitems:
        msum = jnp.sum(mask)
        n_items = jnp.where(msum < 1.0, jnp.float32(1.0), msum)
        return jnp.sum(arg) / n_items
    return jnp.mean(arg)


if __name__ == "__main__":
    keys = jax.random.split(jax.random.PRNGKey(0), 6)

    # 1) NCHW input, default path (mask=None, mean of Charbonnier term)
    x = jax.random.normal(keys[0], (2, 4, 16, 16), dtype=jnp.float32)
    out0 = l1_loss(x)
    jax.block_until_ready(out0)
    ref0 = _reference(x)
    assert jnp.allclose(out0, ref0, rtol=1e-5, atol=1e-6), (out0, ref0)

    # 2) Masked path with divide_nitems=True
    mask = (jax.random.uniform(keys[1], (2, 4, 16, 16)) > 0.5).astype(jnp.float32)
    out1 = l1_loss(x, mask, divide_nitems=True)
    jax.block_until_ready(out1)
    ref1 = _reference(x, mask, divide_nitems=True)
    assert jnp.allclose(out1, ref1, rtol=1e-5, atol=1e-6), (out1, ref1)

    # 3) 3-D input (unsqueeze path), numel % 128 != 0 -> XLA tail path, no pad
    x3 = jax.random.normal(keys[2], (2, 5, 21), dtype=jnp.float32)
    out2 = l1_loss(x3)
    jax.block_until_ready(out2)
    ref2 = _reference(x3)
    assert jnp.allclose(out2, ref2, rtol=1e-5, atol=1e-6), (out2, ref2)

    # 4) Multi-block, odd block count, partial last block: exercises the 2-way
    #    core split, index clamping and last-step row masking (small
    #    test-only block-size override keeps shapes tiny).
    x4 = jax.random.normal(keys[3], (2, 4, 16, 20), dtype=jnp.float32)  # 2560 elems, 20 rows
    out3 = l1_loss(x4, max_block_rows=8)
    jax.block_until_ready(out3)
    ref3 = _reference(x4)
    assert jnp.allclose(out3, ref3, rtol=1e-5, atol=1e-6), (out3, ref3)

    # 5) Masked path with ragged tail AND a partial last block
    x5 = jax.random.normal(keys[4], (3, 5, 7, 11), dtype=jnp.float32)   # 1155 elems
    m5 = (jax.random.uniform(keys[5], (3, 5, 7, 11)) > 0.3).astype(jnp.float32)
    out4 = l1_loss(x5, m5, divide_nitems=True, max_block_rows=8)
    jax.block_until_ready(out4)
    ref4 = _reference(x5, m5, divide_nitems=True)
    assert jnp.allclose(out4, ref4, rtol=1e-5, atol=1e-6), (out4, ref4)

    print("KERNEL_OK")
</pallas_src>

<mosaic_0001>
module attributes {stable_mosaic.version = 11 : i64} {
  func.func @kernel(%arg0: i32, %arg1: i32, %arg2: memref<16x128xf32, #tpu.memory_space<vmem>>, %arg3: memref<1x1xf32, #tpu.memory_space<vmem>>, %arg4: memref<8x128xf32, #tpu.memory_space<vmem>>) attributes {dimension_semantics = [#tpu.dimension_semantics<parallel>, #tpu.dimension_semantics<arbitrary>], iteration_bounds = array<i64: 1, 1>, scalar_prefetch = 0 : i64, scratch_operands = 1 : i64, tpu.core_type = #tpu.core_type<tc>, window_params = [{transform_indices = @transform_0, window_bounds = array<i64: 16, 128>}, {transform_indices = @transform_1, window_bounds = array<i64: 1, 1>}]} {
    %c0_i32 = arith.constant 0 : i32
    %0 = arith.cmpi eq, %arg1, %c0_i32 : i32
    %1 = arith.extui %0 : i1 to i32
    %c0_i32_0 = arith.constant 0 : i32
    %2 = arith.cmpi ne, %1, %c0_i32_0 : i32
    scf.if %2 {
      %cst_9 = arith.constant 0.000000e+00 : f32
      %16 = vector.broadcast %cst_9 : f32 to vector<8x128xf32>
      %c0_10 = arith.constant 0 : index
      %c0_11 = arith.constant 0 : index
      %17 = vector.load %arg4[%c0_10, %c0_11] : memref<8x128xf32, #tpu.memory_space<vmem>>, vector<8x128xf32>
      tpu.vector_store %arg4[%c0_10, %c0_11], %16 {strides = array<i32>} : memref<8x128xf32, #tpu.memory_space<vmem>>, vector<8x128xf32>,
    } else {
    }
    %c0 = arith.constant 0 : index
    %c0_1 = arith.constant 0 : index
    %3 = vector.load %arg2[%c0, %c0_1] : memref<16x128xf32, #tpu.memory_space<vmem>>, vector<16x128xf32>
    %4 = arith.mulf %3, %3 : vector<16x128xf32>
    %cst = arith.constant 1.000000e-10 : f32
    %5 = vector.broadcast %cst : f32 to vector<16x128xf32>
    %6 = arith.addf %5, %4 : vector<16x128xf32>
    %7 = math.sqrt %6 : vector<16x128xf32>
    %c0_2 = arith.constant 0 : index
    %c0_3 = arith.constant 0 : index
    %8 = vector.load %arg4[%c0_2, %c0_3] : memref<8x128xf32, #tpu.memory_space<vmem>>, vector<8x128xf32>
    %9 = vector.shape_cast %7 : vector<16x128xf32> to vector<2x8x128xf32>
    %cst_4 = arith.constant dense<0.000000e+00> : vector<8x128xf32>
    %10 = vector.multi_reduction <add>, %9, %cst_4 [0] : vector<2x8x128xf32> to vector<8x128xf32>
    %11 = arith.addf %8, %10 : vector<8x128xf32>
    %c0_5 = arith.constant 0 : index
    %c0_6 = arith.constant 0 : index
    %12 = vector.load %arg4[%c0_5, %c0_6] : memref<8x128xf32, #tpu.memory_space<vmem>>, vector<8x128xf32>
    tpu.vector_store %arg4[%c0_5, %c0_6], %11 {strides = array<i32>} : memref<8x128xf32, #tpu.memory_space<vmem>>, vector<8x128xf32>,
    %c0_i32_7 = arith.constant 0 : i32
    %13 = arith.cmpi eq, %arg1, %c0_i32_7 : i32
    %14 = arith.extui %13 : i1 to i32
    %c0_i32_8 = arith.constant 0 : i32
    %15 = arith.cmpi ne, %14, %c0_i32_8 : i32
    scf.if %15 {
      %c0_9 = arith.constant 0 : index
      %c0_10 = arith.constant 0 : index
      %16 = vector.load %arg4[%c0_9, %c0_10] : memref<8x128xf32, #tpu.memory_space<vmem>>, vector<8x128xf32>
      %17 = vector.shape_cast %16 : vector<8x128xf32> to vector<1x8x128xf32>
      %cst_11 = arith.constant dense<0.000000e+00> : vector<1xf32>
      %18 = vector.multi_reduction <add>, %17, %cst_11 [1, 2] : vector<1x8x128xf32> to vector<1xf32>
      %19 = vector.shape_cast %18 : vector<1xf32> to vector<1x1x1xf32>
      %20 = vector.extract %19[0, 0, 0] : f32 from vector<1x1x1xf32>
      %21 = vector.broadcast %20 : f32 to vector<1x1xf32>
      %c0_12 = arith.constant 0 : index
      %c0_13 = arith.constant 0 : index
      %22 = vector.load %arg3[%c0_12, %c0_13] : memref<1x1xf32, #tpu.memory_space<vmem>>, vector<1x1xf32>
      tpu.vector_store %arg3[%c0_12, %c0_13], %21 {strides = array<i32>} : memref<1x1xf32, #tpu.memory_space<vmem>>, vector<1x1xf32>,
    } else {
    }
    return
  }
  func.func @transform_0(%arg0: i32, %arg1: i32) -> (i32, i32) {
    %c1_i32 = arith.constant 1 : i32
    %0 = arith.muli %c1_i32, %arg1 : i32
    %1 = arith.addi %0, %arg0 : i32
    %c0_i32 = arith.constant 0 : i32
    %c0_i32_0 = arith.constant 0 : i32
    return %1, %c0_i32 : i32, i32
  }
  func.func @transform_1(%arg0: i32, %arg1: i32) -> (i32, i32) {
    %c0_i32 = arith.constant 0 : i32
    %c0_i32_0 = arith.constant 0 : i32
    return %arg0, %c0_i32 : i32, i32
  }
}

</mosaic_0001>

<bundles_post_ra>
// kernel: tpu_custom_call.1
= control target key start
LH: loop header
LB: loop body
LE: loop exit
PB: predicated region body
PF: predicated region fallthrough
CT: control target
= control target key end

     0   :  { %6 = vsyncpa [#allocation4], 0  ;;  %s163_s0 = inlined_call_operand.hbm [shape: f32[16,128], index: 0, kind: input, shape index: {}]   ;;  %s164_s1 = inlined_call_operand.hbm [shape: f32[1,1], index: 1, kind: output, shape index: {}]  }
   0x1   :  { %7 = vsyncpa [#allocation5], 0  ;;  %s143_s6 = smov [#allocation3]  }
   0x2   :  { %s17_s7 = sshll.u32 %s143_s6, 4  ;;  %s18_s7 = int_to_ptr.vmem [resolvable:$true] %s17_s7 }
   0x3   :  { %s107_s8 = scalar_lea.vmem %s18_s7, 256  ;;  %p112_p1 = scmp.lt.s32.totalorder %s18_s7, %s18_s7 }
   0x4   :  { %p108_p0 = scmp.ne.s32.totalorder %s18_s7, %s107_s8  ;;  %p113_p2 = scmp.lt.s32.totalorder %s107_s8, %s107_s8 }
   0x6   :  { %p114_p3 = por %p113_p2, %p112_p1 }
   0x8   :  { %p115_p4 = pnand %p114_p3, %p108_p0 }
   0xa   :  { %118 = shalt.err (!%p115_p4)
}
   0xb   :  { %s144_s9 = smov 128   ;;  %s145_s10 = smov 8  }
   0xc   :  { %23 = dma.hbm_to_vmem [thread:$0]  %s163_s0, 256, %s18_s7, [#allocation4], %s144_s9, %s144_s9, %s145_s10  }
   0xd   :  { %139 = dma.done.wait [#allocation4], 256  }
   0xe   :  { %140 = vsyncadd [#allocation4], 4294967040  ;;  %v34_v0 = vld [vmem:[#allocation3] sm:$0xff]  ;;  %v35_v1 = vld [vmem:[#allocation3 + $0x8] sm:$0xff]  ;;  %s146_s0 = smov [#allocation6]   ;;  %vm72_vm4 = vcmask 0  }
   0xf   :  { %v36_v2 = vmul.f32 %v34_v0, %v34_v0  ;;  %v37_v3 = vmul.f32 %v35_v1, %v35_v1  ;;  %s80_s13 = sshll.u32 %s146_s0, 4  ;;  %s81_s13 = int_to_ptr.vmem [resolvable:$true] %s80_s13 }
  0x10   :  { %s119_s15 = scalar_lea.vmem %s81_s13, 16  ;;  %s123_s16 = scalar_lea.vmem %s81_s13, 32 }
  0x11   :  { %v38_v4 = vadd.f32 1e-10, %v36_v2  ;;  %v39_v5 = vadd.f32 1e-10, %v37_v3  ;;  %p120_p5 = scmp.ne.s32.totalorder %s81_s13, %s119_s15  ;;  %p124_p6 = scmp.lt.s32.totalorder %s81_s13, %s81_s13 }
  0x12   :  { %p125_p7 = scmp.lt.s32.totalorder %s123_s16, %s119_s15 }
  0x13   :  { %95 = vrsqrt.f32 %v38_v4  ;;  %vm42_vm0 = vcmp.eq.f32.partialorder %v38_v4, inf  ;;  %v45_v7 = vand.u32 2147483648, %v38_v4  ;;  %vm44_vm1 = vcmp.eq.f32.partialorder %v38_v4, 0.0 }
  0x14   :  { %97 = vrsqrt.f32 %v39_v5  ;;  %vm49_vm2 = vcmp.eq.f32.partialorder %v39_v5, inf  ;;  %v52_v10 = vand.u32 2147483648, %v39_v5  ;;  %vm51_vm3 = vcmp.eq.f32.partialorder %v39_v5, 0.0  ;;  %p126_p8 = por %p125_p7, %p124_p6 }
  0x16   :  { %p127_p9 = pnand %p126_p8, %p120_p5 }
  0x20   :  { %v96_v6 = vpop.eup %95 }
  0x21   :  { %v98_v8 = vpop.eup %97  ;;  %v41_v9 = vmul.f32 %v96_v6, %v38_v4 }
  0x22   :  { %v48_v11 = vmul.f32 %v98_v8, %v39_v5 }
  0x23   :  { %v43_v12 = vsel %vm42_vm0, %v38_v4, %v41_v9 }
  0x24   :  { %v46_v13 = vsel %vm44_vm1, %v45_v7, %v43_v12  ;;  %v50_v14 = vsel %vm49_vm2, %v39_v5, %v48_v11 }
  0x25   :  { %v53_v15 = vsel %vm51_vm3, %v52_v10, %v50_v14 }
  0x26   :  { %v55_v16 = vadd.f32 %v53_v15, %v46_v13 }
  0x28   :  { %62 = vadd.xlane.f32.xlu0 %v55_v16 }
  0xb1   :  { %v63_v17 = vpop.xlane.xlu0 %62 }
  0xb2   :  { %v64_v18 = vrot.slane %v63_v17, 4 }
  0xb4   :  { %v65_v19 = vadd.f32 %v64_v18, %v63_v17 }
  0xb6   :  { %v66_v20 = vrot.slane %v65_v19, 2 }
  0xb8   :  { %v67_v21 = vadd.f32 %v66_v20, %v65_v19 }
  0xba   :  { %v68_v22 = vrot.slane %v67_v21, 1 }
  0xbc   :  { %v69_v23 = vadd.f32 %v68_v22, %v67_v21 }
  0xbe   :  { %89 = vpush %v69_v23 }
  0xef   :  { %s90_s14 = spop %89 }
  0xf0   :  { %v71_v24 = vstv %s90_s14 }
  0xf1   :  { %73 = vst.msk [vmem:[#allocation6] sm:$0x1] %vm72_vm4, %v71_v24 }
  0xf2   :  { %130 = shalt.err (!%p127_p9)
}
  0xf3   :  { %83 = dma.vmem_to_hbm [thread:$0]  %s81_s13, 16, %s164_s1, [#allocation5]  }
  0xf4   :  { %141 = dma.done.wait [#allocation5], 16  }
  0xf5   :  { %142 = vsyncadd [#allocation5], 4294967280 }
  0xf6   :  { %87 = vsyncpa [#allocation4], 1 }
  0xf7   :  { %88 = vsyncpa [#allocation5], 1 }

</bundles_post_ra>
